<compile_context>
chip_gen: v7x
topology: tpu7x:2x2x1
jax: 0.10.0
libtpu: 0.0.40
codegen_flags: <defaults>
</compile_context>

<pallas_src>
import jax
import jax.numpy as jnp
from jax import lax
from jax.experimental import pallas as pl
from jax.experimental.pallas import tpu as pltpu


def lstm_fc_kernel(x2d_ref, wih_ref, whh_ref, b_ref, wfc_ref, bfc_ref,
                   out_ref, gx_ref):
    """Single-invocation LSTM + FC head (all operands VMEM-resident, grid=()).

    x2d_ref : (T*B_pad, I)  f32  time-major rows (row t*B_pad + b)
    wih_ref : (I, 4H)       f32  (= weight_ih_l0.T, gate order [i, f, g, o])
    whh_ref : (H, 4H)       f32  (= weight_hh_l0.T)
    b_ref   : (1, 4H)       f32  (= b_ih + b_hh)
    wfc_ref : (H, O)        f32  (= fc.weight.T)
    bfc_ref : (1, O)        f32
    out_ref : (B_pad, O)    f32
    gx_ref  : (T*B_pad, 4H) f32  VMEM scratch for the hoisted input projection
    """
    B_pad = out_ref.shape[0]            # sublane-padded batch (multiple of 8)
    H = whh_ref.shape[0]
    T = x2d_ref.shape[0] // B_pad

    # --- Hoisted input projection: every timestep in ONE MXU matmul,
    # --- stored to VMEM scratch so per-step reads are bounded live ranges.
    gx_ref[...] = jnp.dot(x2d_ref[...], wih_ref[...],
                          preferred_element_type=jnp.float32) + b_ref[...]

    whh = whh_ref[...]                  # f32 (H, 4H), resident for all T steps

    # --- Recurrence: only h @ Whh sits on the serial dependency chain. ---
    def step(t, carry):
        h, c = carry
        row = pl.multiple_of(t * B_pad, B_pad)      # tile-aligned sublane slice
        gates = gx_ref[pl.ds(row, B_pad), :] + jnp.dot(
            h, whh, preferred_element_type=jnp.float32)

        # Two full-width EUP passes (4H = 128 = one lane-vreg at H=32),
        # then cheap static lane slices.  For H >= 64, repack gates as
        # [i, f, o, g] and split the passes 3H / H instead.
        sig = jax.nn.sigmoid(gates)     # covers i, f, o segments
        tnh = jnp.tanh(gates)           # covers g segment

        i_g = sig[:, 0 * H:1 * H]
        f_g = sig[:, 1 * H:2 * H]
        g_g = tnh[:, 2 * H:3 * H]
        o_g = sig[:, 3 * H:4 * H]

        c = f_g * c + i_g * g_g         # f32 elementwise (VPU)
        h = o_g * jnp.tanh(c)
        return h, c

    h0 = jnp.zeros((B_pad, H), jnp.float32)
    c0 = jnp.zeros((B_pad, H), jnp.float32)
    h_T, _ = lax.fori_loop(0, T, step, (h0, c0), unroll=True)

    # --- FC head on the last timestep's hidden state (written once). ---
    out = jnp.dot(h_T, wfc_ref[...],
                  preferred_element_type=jnp.float32) + bfc_ref[...]
    out_ref[...] = out.astype(out_ref.dtype)


def simple_lstm_forward(x, params):
    """x: (B, T, input_size) float32.  Returns (B, output_size) float32."""
    B, T, I = x.shape
    H = params["whh"].shape[0]
    O = params["wfc"].shape[1]

    # Pad the batch to the f32 sublane tile so every per-step slice in the
    # kernel is a clean (8, 128)-tile view.  Padded rows see zero input and
    # zero initial state; their outputs are discarded below.
    B_pad = (B + 7) // 8 * 8
    x_p = jnp.zeros((B_pad, T, I), jnp.float32).at[:B].set(x.astype(jnp.float32))

    # Wrapper-side layout plumbing: time-major, flattened rows so the hoisted
    # input projection is one lane-dense (T*B_pad, I) slab.
    x2d = jnp.transpose(x_p, (1, 0, 2)).reshape(T * B_pad, I)

    vmem = pl.BlockSpec(memory_space=pltpu.MemorySpace.VMEM)
    out_pad = pl.pallas_call(
        lstm_fc_kernel,
        out_shape=jax.ShapeDtypeStruct((B_pad, O), jnp.float32),
        in_specs=[vmem] * 6,            # untiled, fully VMEM-resident operands
        out_specs=vmem,                 # (B_pad, O) resident output
        scratch_shapes=[pltpu.VMEM((T * B_pad, 4 * H), jnp.float32)],
        # Scale-up (v7x): the resident x2d + gx footprint is
        # T*B_pad*(4*I + 16*H) bytes; once that approaches the 64 MiB/TC VMEM,
        # switch to a T-chunk "arbitrary" grid axis with h/c carried in
        # scratch and set vmem_limit_bytes via pltpu.CompilerParams.  With a
        # large padded batch, add a leading "parallel" batch axis so both
        # v7x TensorCores are used.
    )(x2d, params["wih"], params["whh"], params["b"], params["wfc"], params["bfc"])

    return out_pad[:B]


def make_params(key, input_size, hidden_size, output_size):
    """Deterministic synthetic parameters (PyTorch-style uniform init bound)."""
    ks = jax.random.split(key, 6)
    bound = 1.0 / jnp.sqrt(hidden_size)
    u = lambda k, shape: jax.random.uniform(k, shape, jnp.float32, -bound, bound)
    wih = u(ks[0], (input_size, 4 * hidden_size))     # = weight_ih_l0.T
    whh = u(ks[1], (hidden_size, 4 * hidden_size))    # = weight_hh_l0.T
    b_ih = u(ks[2], (4 * hidden_size,))
    b_hh = u(ks[3], (4 * hidden_size,))
    wfc = u(ks[4], (hidden_size, output_size))        # = fc.weight.T
    bfc = u(ks[5], (output_size,))
    return {
        "wih": wih,
        "whh": whh,
        "b": (b_ih + b_hh)[None, :],
        "wfc": wfc,
        "bfc": bfc[None, :],
    }


def reference_forward(x, params):
    """Pure-JAX f32 reference matching PyTorch nn.LSTM semantics (gate order i,f,g,o)."""
    B, T, I = x.shape
    H = params["whh"].shape[0]

    def step(carry, x_t):
        h, c = carry
        gates = x_t @ params["wih"] + h @ params["whh"] + params["b"]
        i = jax.nn.sigmoid(gates[:, 0 * H:1 * H])
        f = jax.nn.sigmoid(gates[:, 1 * H:2 * H])
        g = jnp.tanh(gates[:, 2 * H:3 * H])
        o = jax.nn.sigmoid(gates[:, 3 * H:4 * H])
        c = f * c + i * g
        h = o * jnp.tanh(c)
        return (h, c), None

    h0 = jnp.zeros((B, H), jnp.float32)
    c0 = jnp.zeros((B, H), jnp.float32)
    (h_T, _), _ = jax.lax.scan(step, (h0, c0), jnp.swapaxes(x, 0, 1))
    return h_T @ params["wfc"] + params["bfc"]


if __name__ == "__main__":
    # Small shapes consistent with the module: batch=2, seq=8, input=16,
    # hidden=32, output=8, num_layers=1.
    B, T, I, H, O = 2, 8, 16, 32, 8

    key = jax.random.PRNGKey(0)
    k_x, k_p = jax.random.split(key)
    x = jax.random.normal(k_x, (B, T, I), jnp.float32)
    params = make_params(k_p, I, H, O)

    out = jax.jit(simple_lstm_forward)(x, params)
    out = jax.block_until_ready(out)

    ref = reference_forward(x, params)
    assert out.shape == (B, O)
    # All-f32 operands with f32 MXU accumulation: tight tolerance vs the
    # pure-f32 reference.
    assert jnp.allclose(out, ref, atol=1e-2, rtol=1e-2), "mismatch vs JAX reference"

    print("KERNEL_OK")
</pallas_src>

<mosaic_0001>
module attributes {stable_mosaic.version = 11 : i64} {
  func.func @lstm_fc_kernel(%arg0: memref<64x16xf32, #tpu.memory_space<vmem>>, %arg1: memref<16x128xf32, #tpu.memory_space<vmem>>, %arg2: memref<32x128xf32, #tpu.memory_space<vmem>>, %arg3: memref<1x128xf32, #tpu.memory_space<vmem>>, %arg4: memref<32x8xf32, #tpu.memory_space<vmem>>, %arg5: memref<1x8xf32, #tpu.memory_space<vmem>>, %arg6: memref<8x8xf32, #tpu.memory_space<vmem>>, %arg7: memref<64x128xf32, #tpu.memory_space<vmem>>) attributes {dimension_semantics = [], scalar_prefetch = 0 : i64, scratch_operands = 1 : i64, tpu.core_type = #tpu.core_type<tc>} {
    %c0 = arith.constant 0 : index
    %c0_0 = arith.constant 0 : index
    %0 = vector.load %arg0[%c0, %c0_0] : memref<64x16xf32, #tpu.memory_space<vmem>>, vector<64x16xf32>
    %c0_1 = arith.constant 0 : index
    %c0_2 = arith.constant 0 : index
    %1 = vector.load %arg1[%c0_1, %c0_2] : memref<16x128xf32, #tpu.memory_space<vmem>>, vector<16x128xf32>
    %cst = arith.constant dense<0.000000e+00> : vector<64x128xf32>
    %2 = tpu.matmul %0, %1, %cst {dimension_numbers = #tpu.dot_dimension_numbers<[1], [0], [0], [1], [0, 0, 1, 1], [], []>} : vector<64x16xf32>, vector<16x128xf32>, vector<64x128xf32> -> vector<64x128xf32>
    %c0_3 = arith.constant 0 : index
    %c0_4 = arith.constant 0 : index
    %3 = vector.load %arg3[%c0_3, %c0_4] : memref<1x128xf32, #tpu.memory_space<vmem>>, vector<1x128xf32>
    %4 = vector.broadcast %3 : vector<1x128xf32> to vector<64x128xf32>
    %5 = arith.addf %2, %4 : vector<64x128xf32>
    %c0_5 = arith.constant 0 : index
    %c0_6 = arith.constant 0 : index
    %6 = vector.load %arg7[%c0_5, %c0_6] : memref<64x128xf32, #tpu.memory_space<vmem>>, vector<64x128xf32>
    tpu.vector_store %arg7[%c0_5, %c0_6], %5 {strides = array<i32>} : memref<64x128xf32, #tpu.memory_space<vmem>>, vector<64x128xf32>,
    %c0_7 = arith.constant 0 : index
    %c0_8 = arith.constant 0 : index
    %7 = vector.load %arg2[%c0_7, %c0_8] : memref<32x128xf32, #tpu.memory_space<vmem>>, vector<32x128xf32>
    %cst_9 = arith.constant 0.000000e+00 : f32
    %8 = vector.broadcast %cst_9 : f32 to vector<8x32xf32>
    %cst_10 = arith.constant 0.000000e+00 : f32
    %9 = vector.broadcast %cst_10 : f32 to vector<8x32xf32>
    %c0_i32 = arith.constant 0 : i32
    %c8_i32 = arith.constant 8 : i32
    %10 = arith.muli %c0_i32, %c8_i32 : i32
    %11 = tpu.assume_multiple %10, 8 : i32
    %12 = arith.index_cast %11 : i32 to index
    %c0_11 = arith.constant 0 : index
    %13 = vector.load %arg7[%12, %c0_11] : memref<64x128xf32, #tpu.memory_space<vmem>>, vector<8x128xf32>
    %cst_12 = arith.constant dense<0.000000e+00> : vector<8x128xf32>
    %14 = tpu.matmul %8, %7, %cst_12 {dimension_numbers = #tpu.dot_dimension_numbers<[1], [0], [0], [1], [0, 0, 1, 1], [], []>} : vector<8x32xf32>, vector<32x128xf32>, vector<8x128xf32> -> vector<8x128xf32>
    %15 = arith.addf %13, %14 : vector<8x128xf32>
    %16 = arith.negf %15 : vector<8x128xf32>
    %17 = math.exp %16 : vector<8x128xf32>
    %cst_13 = arith.constant 1.000000e+00 : f32
    %18 = vector.broadcast %cst_13 : f32 to vector<8x128xf32>
    %19 = arith.addf %18, %17 : vector<8x128xf32>
    %20 = arith.divf %18, %19 : vector<8x128xf32>
    %21 = math.tanh %15 : vector<8x128xf32>
    %22 = vector.extract_strided_slice %20 {offsets = [0, 0], sizes = [8, 32], strides = [1, 1]} : vector<8x128xf32> to vector<8x32xf32>
    %23 = vector.extract_strided_slice %20 {offsets = [0, 32], sizes = [8, 32], strides = [1, 1]} : vector<8x128xf32> to vector<8x32xf32>
    %24 = vector.extract_strided_slice %21 {offsets = [0, 64], sizes = [8, 32], strides = [1, 1]} : vector<8x128xf32> to vector<8x32xf32>
    %25 = vector.extract_strided_slice %20 {offsets = [0, 96], sizes = [8, 32], strides = [1, 1]} : vector<8x128xf32> to vector<8x32xf32>
    %26 = arith.mulf %23, %9 : vector<8x32xf32>
    %27 = arith.mulf %22, %24 : vector<8x32xf32>
    %28 = arith.addf %26, %27 : vector<8x32xf32>
    %29 = math.tanh %28 : vector<8x32xf32>
    %30 = arith.mulf %25, %29 : vector<8x32xf32>
    %c1_i32 = arith.constant 1 : i32
    %c8_i32_14 = arith.constant 8 : i32
    %31 = arith.muli %c1_i32, %c8_i32_14 : i32
    %32 = tpu.assume_multiple %31, 8 : i32
    %33 = arith.index_cast %32 : i32 to index
    %c0_15 = arith.constant 0 : index
    %34 = vector.load %arg7[%33, %c0_15] : memref<64x128xf32, #tpu.memory_space<vmem>>, vector<8x128xf32>
    %cst_16 = arith.constant dense<0.000000e+00> : vector<8x128xf32>
    %35 = tpu.matmul %30, %7, %cst_16 {dimension_numbers = #tpu.dot_dimension_numbers<[1], [0], [0], [1], [0, 0, 1, 1], [], []>} : vector<8x32xf32>, vector<32x128xf32>, vector<8x128xf32> -> vector<8x128xf32>
    %36 = arith.addf %34, %35 : vector<8x128xf32>
    %37 = arith.negf %36 : vector<8x128xf32>
    %38 = math.exp %37 : vector<8x128xf32>
    %cst_17 = arith.constant 1.000000e+00 : f32
    %39 = vector.broadcast %cst_17 : f32 to vector<8x128xf32>
    %40 = arith.addf %39, %38 : vector<8x128xf32>
    %41 = arith.divf %39, %40 : vector<8x128xf32>
    %42 = math.tanh %36 : vector<8x128xf32>
    %43 = vector.extract_strided_slice %41 {offsets = [0, 0], sizes = [8, 32], strides = [1, 1]} : vector<8x128xf32> to vector<8x32xf32>
    %44 = vector.extract_strided_slice %41 {offsets = [0, 32], sizes = [8, 32], strides = [1, 1]} : vector<8x128xf32> to vector<8x32xf32>
    %45 = vector.extract_strided_slice %42 {offsets = [0, 64], sizes = [8, 32], strides = [1, 1]} : vector<8x128xf32> to vector<8x32xf32>
    %46 = vector.extract_strided_slice %41 {offsets = [0, 96], sizes = [8, 32], strides = [1, 1]} : vector<8x128xf32> to vector<8x32xf32>
    %47 = arith.mulf %44, %28 : vector<8x32xf32>
    %48 = arith.mulf %43, %45 : vector<8x32xf32>
    %49 = arith.addf %47, %48 : vector<8x32xf32>
    %50 = math.tanh %49 : vector<8x32xf32>
    %51 = arith.mulf %46, %50 : vector<8x32xf32>
    %c2_i32 = arith.constant 2 : i32
    %c8_i32_18 = arith.constant 8 : i32
    %52 = arith.muli %c2_i32, %c8_i32_18 : i32
    %53 = tpu.assume_multiple %52, 8 : i32
    %54 = arith.index_cast %53 : i32 to index
    %c0_19 = arith.constant 0 : index
    %55 = vector.load %arg7[%54, %c0_19] : memref<64x128xf32, #tpu.memory_space<vmem>>, vector<8x128xf32>
    %cst_20 = arith.constant dense<0.000000e+00> : vector<8x128xf32>
    %56 = tpu.matmul %51, %7, %cst_20 {dimension_numbers = #tpu.dot_dimension_numbers<[1], [0], [0], [1], [0, 0, 1, 1], [], []>} : vector<8x32xf32>, vector<32x128xf32>, vector<8x128xf32> -> vector<8x128xf32>
    %57 = arith.addf %55, %56 : vector<8x128xf32>
    %58 = arith.negf %57 : vector<8x128xf32>
    %59 = math.exp %58 : vector<8x128xf32>
    %cst_21 = arith.constant 1.000000e+00 : f32
    %60 = vector.broadcast %cst_21 : f32 to vector<8x128xf32>
    %61 = arith.addf %60, %59 : vector<8x128xf32>
    %62 = arith.divf %60, %61 : vector<8x128xf32>
    %63 = math.tanh %57 : vector<8x128xf32>
    %64 = vector.extract_strided_slice %62 {offsets = [0, 0], sizes = [8, 32], strides = [1, 1]} : vector<8x128xf32> to vector<8x32xf32>
    %65 = vector.extract_strided_slice %62 {offsets = [0, 32], sizes = [8, 32], strides = [1, 1]} : vector<8x128xf32> to vector<8x32xf32>
    %66 = vector.extract_strided_slice %63 {offsets = [0, 64], sizes = [8, 32], strides = [1, 1]} : vector<8x128xf32> to vector<8x32xf32>
    %67 = vector.extract_strided_slice %62 {offsets = [0, 96], sizes = [8, 32], strides = [1, 1]} : vector<8x128xf32> to vector<8x32xf32>
    %68 = arith.mulf %65, %49 : vector<8x32xf32>
    %69 = arith.mulf %64, %66 : vector<8x32xf32>
    %70 = arith.addf %68, %69 : vector<8x32xf32>
    %71 = math.tanh %70 : vector<8x32xf32>
    %72 = arith.mulf %67, %71 : vector<8x32xf32>
    %c3_i32 = arith.constant 3 : i32
    %c8_i32_22 = arith.constant 8 : i32
    %73 = arith.muli %c3_i32, %c8_i32_22 : i32
    %74 = tpu.assume_multiple %73, 8 : i32
    %75 = arith.index_cast %74 : i32 to index
    %c0_23 = arith.constant 0 : index
    %76 = vector.load %arg7[%75, %c0_23] : memref<64x128xf32, #tpu.memory_space<vmem>>, vector<8x128xf32>
    %cst_24 = arith.constant dense<0.000000e+00> : vector<8x128xf32>
    %77 = tpu.matmul %72, %7, %cst_24 {dimension_numbers = #tpu.dot_dimension_numbers<[1], [0], [0], [1], [0, 0, 1, 1], [], []>} : vector<8x32xf32>, vector<32x128xf32>, vector<8x128xf32> -> vector<8x128xf32>
    %78 = arith.addf %76, %77 : vector<8x128xf32>
    %79 = arith.negf %78 : vector<8x128xf32>
    %80 = math.exp %79 : vector<8x128xf32>
    %cst_25 = arith.constant 1.000000e+00 : f32
    %81 = vector.broadcast %cst_25 : f32 to vector<8x128xf32>
    %82 = arith.addf %81, %80 : vector<8x128xf32>
    %83 = arith.divf %81, %82 : vector<8x128xf32>
    %84 = math.tanh %78 : vector<8x128xf32>
    %85 = vector.extract_strided_slice %83 {offsets = [0, 0], sizes = [8, 32], strides = [1, 1]} : vector<8x128xf32> to vector<8x32xf32>
    %86 = vector.extract_strided_slice %83 {offsets = [0, 32], sizes = [8, 32], strides = [1, 1]} : vector<8x128xf32> to vector<8x32xf32>
    %87 = vector.extract_strided_slice %84 {offsets = [0, 64], sizes = [8, 32], strides = [1, 1]} : vector<8x128xf32> to vector<8x32xf32>
    %88 = vector.extract_strided_slice %83 {offsets = [0, 96], sizes = [8, 32], strides = [1, 1]} : vector<8x128xf32> to vector<8x32xf32>
    %89 = arith.mulf %86, %70 : vector<8x32xf32>
    %90 = arith.mulf %85, %87 : vector<8x32xf32>
    %91 = arith.addf %89, %90 : vector<8x32xf32>
    %92 = math.tanh %91 : vector<8x32xf32>
    %93 = arith.mulf %88, %92 : vector<8x32xf32>
    %c4_i32 = arith.constant 4 : i32
    %c8_i32_26 = arith.constant 8 : i32
    %94 = arith.muli %c4_i32, %c8_i32_26 : i32
    %95 = tpu.assume_multiple %94, 8 : i32
    %96 = arith.index_cast %95 : i32 to index
    %c0_27 = arith.constant 0 : index
    %97 = vector.load %arg7[%96, %c0_27] : memref<64x128xf32, #tpu.memory_space<vmem>>, vector<8x128xf32>
    %cst_28 = arith.constant dense<0.000000e+00> : vector<8x128xf32>
    %98 = tpu.matmul %93, %7, %cst_28 {dimension_numbers = #tpu.dot_dimension_numbers<[1], [0], [0], [1], [0, 0, 1, 1], [], []>} : vector<8x32xf32>, vector<32x128xf32>, vector<8x128xf32> -> vector<8x128xf32>
    %99 = arith.addf %97, %98 : vector<8x128xf32>
    %100 = arith.negf %99 : vector<8x128xf32>
    %101 = math.exp %100 : vector<8x128xf32>
    %cst_29 = arith.constant 1.000000e+00 : f32
    %102 = vector.broadcast %cst_29 : f32 to vector<8x128xf32>
    %103 = arith.addf %102, %101 : vector<8x128xf32>
    %104 = arith.divf %102, %103 : vector<8x128xf32>
    %105 = math.tanh %99 : vector<8x128xf32>
    %106 = vector.extract_strided_slice %104 {offsets = [0, 0], sizes = [8, 32], strides = [1, 1]} : vector<8x128xf32> to vector<8x32xf32>
    %107 = vector.extract_strided_slice %104 {offsets = [0, 32], sizes = [8, 32], strides = [1, 1]} : vector<8x128xf32> to vector<8x32xf32>
    %108 = vector.extract_strided_slice %105 {offsets = [0, 64], sizes = [8, 32], strides = [1, 1]} : vector<8x128xf32> to vector<8x32xf32>
    %109 = vector.extract_strided_slice %104 {offsets = [0, 96], sizes = [8, 32], strides = [1, 1]} : vector<8x128xf32> to vector<8x32xf32>
    %110 = arith.mulf %107, %91 : vector<8x32xf32>
    %111 = arith.mulf %106, %108 : vector<8x32xf32>
    %112 = arith.addf %110, %111 : vector<8x32xf32>
    %113 = math.tanh %112 : vector<8x32xf32>
    %114 = arith.mulf %109, %113 : vector<8x32xf32>
    %c5_i32 = arith.constant 5 : i32
    %c8_i32_30 = arith.constant 8 : i32
    %115 = arith.muli %c5_i32, %c8_i32_30 : i32
    %116 = tpu.assume_multiple %115, 8 : i32
    %117 = arith.index_cast %116 : i32 to index
    %c0_31 = arith.constant 0 : index
    %118 = vector.load %arg7[%117, %c0_31] : memref<64x128xf32, #tpu.memory_space<vmem>>, vector<8x128xf32>
    %cst_32 = arith.constant dense<0.000000e+00> : vector<8x128xf32>
    %119 = tpu.matmul %114, %7, %cst_32 {dimension_numbers = #tpu.dot_dimension_numbers<[1], [0], [0], [1], [0, 0, 1, 1], [], []>} : vector<8x32xf32>, vector<32x128xf32>, vector<8x128xf32> -> vector<8x128xf32>
    %120 = arith.addf %118, %119 : vector<8x128xf32>
    %121 = arith.negf %120 : vector<8x128xf32>
    %122 = math.exp %121 : vector<8x128xf32>
    %cst_33 = arith.constant 1.000000e+00 : f32
    %123 = vector.broadcast %cst_33 : f32 to vector<8x128xf32>
    %124 = arith.addf %123, %122 : vector<8x128xf32>
    %125 = arith.divf %123, %124 : vector<8x128xf32>
    %126 = math.tanh %120 : vector<8x128xf32>
    %127 = vector.extract_strided_slice %125 {offsets = [0, 0], sizes = [8, 32], strides = [1, 1]} : vector<8x128xf32> to vector<8x32xf32>
    %128 = vector.extract_strided_slice %125 {offsets = [0, 32], sizes = [8, 32], strides = [1, 1]} : vector<8x128xf32> to vector<8x32xf32>
    %129 = vector.extract_strided_slice %126 {offsets = [0, 64], sizes = [8, 32], strides = [1, 1]} : vector<8x128xf32> to vector<8x32xf32>
    %130 = vector.extract_strided_slice %125 {offsets = [0, 96], sizes = [8, 32], strides = [1, 1]} : vector<8x128xf32> to vector<8x32xf32>
    %131 = arith.mulf %128, %112 : vector<8x32xf32>
    %132 = arith.mulf %127, %129 : vector<8x32xf32>
    %133 = arith.addf %131, %132 : vector<8x32xf32>
    %134 = math.tanh %133 : vector<8x32xf32>
    %135 = arith.mulf %130, %134 : vector<8x32xf32>
    %c6_i32 = arith.constant 6 : i32
    %c8_i32_34 = arith.constant 8 : i32
    %136 = arith.muli %c6_i32, %c8_i32_34 : i32
    %137 = tpu.assume_multiple %136, 8 : i32
    %138 = arith.index_cast %137 : i32 to index
    %c0_35 = arith.constant 0 : index
    %139 = vector.load %arg7[%138, %c0_35] : memref<64x128xf32, #tpu.memory_space<vmem>>, vector<8x128xf32>
    %cst_36 = arith.constant dense<0.000000e+00> : vector<8x128xf32>
    %140 = tpu.matmul %135, %7, %cst_36 {dimension_numbers = #tpu.dot_dimension_numbers<[1], [0], [0], [1], [0, 0, 1, 1], [], []>} : vector<8x32xf32>, vector<32x128xf32>, vector<8x128xf32> -> vector<8x128xf32>
    %141 = arith.addf %139, %140 : vector<8x128xf32>
    %142 = arith.negf %141 : vector<8x128xf32>
    %143 = math.exp %142 : vector<8x128xf32>
    %cst_37 = arith.constant 1.000000e+00 : f32
    %144 = vector.broadcast %cst_37 : f32 to vector<8x128xf32>
    %145 = arith.addf %144, %143 : vector<8x128xf32>
    %146 = arith.divf %144, %145 : vector<8x128xf32>
    %147 = math.tanh %141 : vector<8x128xf32>
    %148 = vector.extract_strided_slice %146 {offsets = [0, 0], sizes = [8, 32], strides = [1, 1]} : vector<8x128xf32> to vector<8x32xf32>
    %149 = vector.extract_strided_slice %146 {offsets = [0, 32], sizes = [8, 32], strides = [1, 1]} : vector<8x128xf32> to vector<8x32xf32>
    %150 = vector.extract_strided_slice %147 {offsets = [0, 64], sizes = [8, 32], strides = [1, 1]} : vector<8x128xf32> to vector<8x32xf32>
    %151 = vector.extract_strided_slice %146 {offsets = [0, 96], sizes = [8, 32], strides = [1, 1]} : vector<8x128xf32> to vector<8x32xf32>
    %152 = arith.mulf %149, %133 : vector<8x32xf32>
    %153 = arith.mulf %148, %150 : vector<8x32xf32>
    %154 = arith.addf %152, %153 : vector<8x32xf32>
    %155 = math.tanh %154 : vector<8x32xf32>
    %156 = arith.mulf %151, %155 : vector<8x32xf32>
    %c7_i32 = arith.constant 7 : i32
    %c8_i32_38 = arith.constant 8 : i32
    %157 = arith.muli %c7_i32, %c8_i32_38 : i32
    %158 = tpu.assume_multiple %157, 8 : i32
    %159 = arith.index_cast %158 : i32 to index
    %c0_39 = arith.constant 0 : index
    %160 = vector.load %arg7[%159, %c0_39] : memref<64x128xf32, #tpu.memory_space<vmem>>, vector<8x128xf32>
    %cst_40 = arith.constant dense<0.000000e+00> : vector<8x128xf32>
    %161 = tpu.matmul %156, %7, %cst_40 {dimension_numbers = #tpu.dot_dimension_numbers<[1], [0], [0], [1], [0, 0, 1, 1], [], []>} : vector<8x32xf32>, vector<32x128xf32>, vector<8x128xf32> -> vector<8x128xf32>
    %162 = arith.addf %160, %161 : vector<8x128xf32>
    %163 = arith.negf %162 : vector<8x128xf32>
    %164 = math.exp %163 : vector<8x128xf32>
    %cst_41 = arith.constant 1.000000e+00 : f32
    %165 = vector.broadcast %cst_41 : f32 to vector<8x128xf32>
    %166 = arith.addf %165, %164 : vector<8x128xf32>
    %167 = arith.divf %165, %166 : vector<8x128xf32>
    %168 = math.tanh %162 : vector<8x128xf32>
    %169 = vector.extract_strided_slice %167 {offsets = [0, 0], sizes = [8, 32], strides = [1, 1]} : vector<8x128xf32> to vector<8x32xf32>
    %170 = vector.extract_strided_slice %167 {offsets = [0, 32], sizes = [8, 32], strides = [1, 1]} : vector<8x128xf32> to vector<8x32xf32>
    %171 = vector.extract_strided_slice %168 {offsets = [0, 64], sizes = [8, 32], strides = [1, 1]} : vector<8x128xf32> to vector<8x32xf32>
    %172 = vector.extract_strided_slice %167 {offsets = [0, 96], sizes = [8, 32], strides = [1, 1]} : vector<8x128xf32> to vector<8x32xf32>
    %173 = arith.mulf %170, %154 : vector<8x32xf32>
    %174 = arith.mulf %169, %171 : vector<8x32xf32>
    %175 = arith.addf %173, %174 : vector<8x32xf32>
    %176 = math.tanh %175 : vector<8x32xf32>
    %177 = arith.mulf %172, %176 : vector<8x32xf32>
    %c8_i32_42 = arith.constant 8 : i32
    %c0_43 = arith.constant 0 : index
    %c0_44 = arith.constant 0 : index
    %178 = vector.load %arg4[%c0_43, %c0_44] : memref<32x8xf32, #tpu.memory_space<vmem>>, vector<32x8xf32>
    %cst_45 = arith.constant dense<0.000000e+00> : vector<8x8xf32>
    %179 = tpu.matmul %177, %178, %cst_45 {dimension_numbers = #tpu.dot_dimension_numbers<[1], [0], [0], [1], [0, 0, 1, 1], [], []>} : vector<8x32xf32>, vector<32x8xf32>, vector<8x8xf32> -> vector<8x8xf32>
    %c0_46 = arith.constant 0 : index
    %c0_47 = arith.constant 0 : index
    %180 = vector.load %arg5[%c0_46, %c0_47] : memref<1x8xf32, #tpu.memory_space<vmem>>, vector<1x8xf32>
    %181 = vector.broadcast %180 : vector<1x8xf32> to vector<8x8xf32>
    %182 = arith.addf %179, %181 : vector<8x8xf32>
    %c0_48 = arith.constant 0 : index
    %c0_49 = arith.constant 0 : index
    %183 = vector.load %arg6[%c0_48, %c0_49] : memref<8x8xf32, #tpu.memory_space<vmem>>, vector<8x8xf32>
    tpu.vector_store %arg6[%c0_48, %c0_49], %182 {strides = array<i32>} : memref<8x8xf32, #tpu.memory_space<vmem>>, vector<8x8xf32>,
    return
  }
}

</mosaic_0001>

<bundles_post_ra>
// kernel: simple_lstm_forward.1
= control target key start
LH: loop header
LB: loop body
LE: loop exit
PB: predicated region body
PF: predicated region fallthrough
CT: control target
= control target key end

     0   :  { %vm40_vm0 = vcmask 130048   ;;  %v1411_v0 = vmov 0.0|0.0   ;;  %vm1412_vm1 = vmmov 0   ;;  %v1413_v4 = vmov 0.0   ;;  %s1414_s13 = smov 64   ;;  %s1641_s1 = inlined_call_operand.vmem [shape: f32[16,128], index: 1, kind: input, shape index: {}]   ;;  %s1642_s2 = inlined_call_operand.vmem [shape: f32[32,128], index: 2, kind: input, shape index: {}]   ;;  %s1643_s0 = inlined_call_operand.vmem [shape: f32[64,16], index: 0, kind: input, shape index: {}]   ;;  %s1644_s3 = inlined_call_operand.vmem [shape: f32[1,128], index: 3, kind: input, shape index: {}]   ;;  %s1645_s4 = inlined_call_operand.vmem [shape: f32[32,8], index: 4, kind: input, shape index: {}]   ;;  %s1646_s5 = inlined_call_operand.vmem [shape: f32[1,8], index: 5, kind: input, shape index: {}]   ;;  %s1647_s6 = inlined_call_operand.vmem [shape: f32[8,8], index: 6, kind: output, shape index: {}]  }
   0x1   :  { %1288 = vmatprep.subr.bf16.mxu1 %v1411_v0  ;;  %v31_v1 = vld [vmem:[%s1641_s1] sm:$0xff]  ;;  %v32_v2 = vld [vmem:[%s1641_s1 + $0x8] sm:$0xff]  ;;  %1193 = vmatprep.mubr.msk.f32.mxu1 %vm1412_vm1, %v1413_v4  ;;  %v180_v9 = vld [vmem:[%s1642_s2 + $0x10] sm:$0xff]  ;;  %vm183_vm2 = vcmask 261120   ;;  %vm1082_vm3 = vcmask 64512  }
   0x2   :  { %v178_v3 = vld [vmem:[%s1642_s2] sm:$0xff]  ;;  %v1284_v5 = vpack.c.bf16 %v32_v2, %v31_v1  ;;  %v179_v6 = vld [vmem:[%s1642_s2 + $0x8] sm:$0xff]  ;;  %v181_v10 = vld [vmem:[%s1642_s2 + $0x18] sm:$0xff] }
   0x3   :  { %v23_v7 = vld [vmem:[%s1643_s0] sm:$0xff]  ;;  %v1469_v8 = vpack.c.bf16 %v179_v6, %v178_v3  ;;  %v24_v11 = vld [vmem:[%s1643_s0 + $0x8] sm:$0xff]  ;;  %v1482_v12 = vpack.c.bf16 %v181_v10, %v180_v9  ;;  %v25_v48 = vld [vmem:[%s1643_s0 + $0x10] sm:$0xff] }
   0x4   :  { %1173 = vmatprep.mubr.msk.f32.mxu0 %vm40_vm0, %v23_v7  ;;  %1285 = vmatprep.subr.bf16.mxu0 %v1284_v5  ;;  %v1503_v13 = vld [vmem:[%s1644_s3] ss:$0 sm:$0xff]  ;;  %s1415_s3 = smov 32   ;;  %v26_v49 = vld [vmem:[%s1643_s0 + $0x18] sm:$0xff]  ;;  %v28_v51 = vld [vmem:[%s1643_s0 + $0x28] sm:$0xff] }
   0x5   :  { %1290 = vmatpush3.bf16.msra.mxu1 %v1469_v8  ;;  %1287 = vmatpush3.bf16.msra.mxu0 %v1284_v5  ;;  %v27_v50 = vld [vmem:[%s1643_s0 + $0x20] sm:$0xff]  ;;  %v29_v52 = vld [vmem:[%s1643_s0 + $0x30] sm:$0xff]  ;;  %v30_v53 = vld [vmem:[%s1643_s0 + $0x38] sm:$0xff] }
   0x6   :  { %1291 = vmatprep.subr.bf16.mxu1 %v1411_v0  ;;  %1300 = vmatprep.subr.bf16.mxu0 %v1411_v0 }
   0x8   :  { %1174 = vmatmul.mubr.msk.f32.vlgmr.msra.gmra.mrb[0].mxu0 %vm40_vm0, %v24_v11 }
   0x9   :  { %1293 = vmatpush3.bf16.msra.mxu1 %v1482_v12  ;;  %1302 = vmatpush3.bf16.msra.mxu0 %v1469_v8 }
   0xa   :  { %1294 = vmatprep.subr.bf16.mxu1 %v1411_v0  ;;  %1303 = vmatprep.subr.bf16.mxu0 %v1411_v0 }
   0xb   :  { %1176 = vmatprep.mubr.msk.f32.mxu0 %vm40_vm0, %v25_v48 }
   0xc   :  { %1194 = vmatmul.mubr.f32.vlgmr.msra.gmra.mrb[0].mxu1 %v1413_v4  ;;  %1177 = vmatmul.mubr.msk.f32.gmra.mrb[2].mxu0 %vm40_vm0, %v26_v49 }
   0xd   :  { %1296 = vmatpush3.bf16.msra.mxu1 %v1469_v8  ;;  %1204 = vmatprep.mubr.msk.f32.mxu1 %vm1412_vm1, %v1413_v4 }
   0xe   :  { %1297 = vmatprep.subr.bf16.mxu1 %v1411_v0  ;;  %1305 = vmatpush3.bf16.msra.mxu0 %v1482_v12 }
   0xf   :  { %1312 = vmatprep.subr.bf16.mxu0 %v1411_v0  ;;  %1179 = vmatprep.mubr.msk.f32.mxu0 %vm40_vm0, %v27_v50 }
  0x10   :  { %1180 = vmatmul.mubr.msk.f32.gmra.mrb[4].mxu0 %vm40_vm0, %v28_v51 }
  0x11   :  { %1299 = vmatpush3.bf16.msra.mxu1 %v1482_v12  ;;  %1182 = vmatprep.mubr.msk.f32.mxu0 %vm40_vm0, %v29_v52 }
  0x12   :  { %1306 = vmatprep.subr.bf16.mxu1 %v1411_v0 }
  0x14   :  { %1183 = vmatmul.mubr.msk.f32.gmra.mrb[6].mxu0 %vm40_vm0, %v30_v53 }
  0x15   :  { %1215 = vmatprep.mubr.msk.f32.mxu0 %vm1412_vm1, %v1413_v4 }
  0xdb   :  { %v1175_v14 = vpop.f32.mrb[0].mxu0 }
  0xdc   :  { %v131_v15 = vpop.f32.mrb[1].mxu0  ;;  %v137_v34 = vadd.f32 %v1175_v14, %v1503_v13 }
  0xdd   :  { %v132_v16 = vadd.f32 %v1503_v13, %v131_v15 }
  0xdf   :  { %v253_v17 = vpop.f32.mrb[0].mxu1  ;;  %v1178_v57 = vpop.f32.mrb[2].mxu0 }
  0xe0   :  { %v257_v18 = vadd.f32 %v253_v17, %v132_v16  ;;  %v1195_v19 = vpop.f32.mrb[1].mxu1  ;;  %v141_v58 = vpop.f32.mrb[3].mxu0 }
  0xe1   :  { %v142_v1 = vadd.f32 %v1503_v13, %v141_v58 }
  0xe2   :  { %1347 = vtanh.f32 %v257_v18  ;;  %v1097_v21 = vmul.f32 -1.442695, %v257_v18 }
  0xe3   :  { %v1548_v59 = vpop.f32.mrb[4].mxu0 }
  0xe4   :  { %1349 = vpow2.f32 %v1097_v21  ;;  %v1550_v60 = vpop.f32.mrb[5].mxu0 }
  0xe7   :  { %v1552_v61 = vpop.f32.mrb[6].mxu0 }
  0xe8   :  { %v1554_v62 = vpop.f32.mrb[7].mxu0 }
  0xec   :  { %v1348_v20 = vpop.eup %1347 }
  0xed   :  { %267 = vrot.lane.b32.xlu0 %v1348_v20, %s1414_s13 }
  0xee   :  { %v1350_v22 = vpop.eup %1349 }
  0xef   :  { %v261_v23 = vadd.f32 1.0, %v1350_v22 }
  0xf1   :  { %1351 = vrcp.f32 %v261_v23  ;;  %v147_v23 = vadd.f32 %v1178_v57, %v1503_v13 }
  0xfb   :  { %v1352_v24 = vpop.eup %1351 }
  0xfc   :  { %v265_v27 = vmul.f32 0.0, %v1352_v24 }
 0x15f   :  { %v268_v25 = vpop.permute.xlu0 %267 }
 0x160   :  { %v270_v26 = vmul.f32 %v1352_v24, %v268_v25 }
 0x162   :  { %272 = vrot.lane.b32.xlu0 %v270_v26, %s1415_s3 }
 0x1d4   :  { %v273_v28 = vpop.permute.xlu0 %272 }
 0x1d5   :  { %v275_v29 = vadd.f32 %v273_v28, %v265_v27 }
 0x1d7   :  { %1353 = vtanh.f32 %v275_v29 }
 0x1e1   :  { %v1354_v30 = vpop.eup %1353 }
 0x1e2   :  { %278 = vrot.lane.b32.xlu1 %v1354_v30, %s1414_s13 }
 0x254   :  { %v279_v31 = vpop.permute.xlu1 %278 }
 0x255   :  { %v281_v32 = vmul.f32 %v1352_v24, %v279_v31 }
 0x257   :  { %285 = vrot.lane.b32.xlu1 %v281_v32, %s1415_s3 }
 0x2c9   :  { %v286_v33 = vpop.permute.xlu1 %285 }
 0x2ca   :  { %1205 = vmatmul.mubr.msk.f32.vlgmr.msra.gmra.mrb[2].mxu1 %vm183_vm2, %v286_v33 }
 0x2cb   :  { %1308 = vmatpush3.bf16.msra.mxu1 %v1469_v8  ;;  %1226 = vmatprep.mubr.msk.f32.mxu1 %vm1412_vm1, %v1413_v4 }
 0x2cc   :  { %1309 = vmatprep.subr.bf16.mxu1 %v1411_v0 }
 0x2cf   :  { %1311 = vmatpush3.bf16.msra.mxu1 %v1482_v12 }
 0x2d0   :  { %1318 = vmatprep.subr.bf16.mxu1 %v1411_v0 }
 0x39d   :  { %v355_v35 = vpop.f32.mrb[2].mxu1 }
 0x39e   :  { %v359_v36 = vadd.f32 %v355_v35, %v137_v34  ;;  %v1206_v37 = vpop.f32.mrb[3].mxu1 }
 0x3a0   :  { %1355 = vtanh.f32 %v359_v36  ;;  %v1099_v39 = vmul.f32 -1.442695, %v359_v36 }
 0x3a2   :  { %1357 = vpow2.f32 %v1099_v39 }
 0x3aa   :  { %v1356_v38 = vpop.eup %1355 }
 0x3ab   :  { %369 = vrot.lane.b32.xlu0 %v1356_v38, %s1414_s13 }
 0x3ac   :  { %v1358_v40 = vpop.eup %1357 }
 0x3ad   :  { %v363_v41 = vadd.f32 1.0, %v1358_v40 }
 0x3af   :  { %1359 = vrcp.f32 %v363_v41  ;;  %v152_v41 = vadd.f32 %v1503_v13, %v1550_v60  ;;  %v157_v60 = vadd.f32 %v1548_v59, %v1503_v13 }
 0x3b9   :  { %v1360_v42 = vpop.eup %1359 }
 0x3ba   :  { %v367_v45 = vmul.f32 %v1360_v42, %v275_v29 }
 0x41d   :  { %v370_v43 = vpop.permute.xlu0 %369 }
 0x41e   :  { %v372_v44 = vmul.f32 %v1360_v42, %v370_v43 }
 0x420   :  { %374 = vrot.lane.b32.xlu1 %v372_v44, %s1415_s3 }
 0x492   :  { %v375_v46 = vpop.permute.xlu1 %374 }
 0x493   :  { %v377_v47 = vadd.f32 %v375_v46, %v367_v45 }
 0x495   :  { %1361 = vtanh.f32 %v377_v47 }
 0x49f   :  { %v1362_v54 = vpop.eup %1361 }
 0x4a0   :  { %380 = vrot.lane.b32.xlu0 %v1362_v54, %s1414_s13 }
 0x512   :  { %v381_v55 = vpop.permute.xlu0 %380 }
 0x513   :  { %v383_v56 = vmul.f32 %v1360_v42, %v381_v55 }
 0x515   :  { %387 = vrot.lane.b32.xlu1 %v383_v56, %s1415_s3 }
 0x587   :  { %v388_v63 = vpop.permute.xlu1 %387 }
 0x588   :  { %1216 = vmatmul.mubr.msk.f32.vlgmr.msra.gmra.mrb[8].mxu0 %vm183_vm2, %v388_v63 }
 0x589   :  { %1314 = vmatpush3.bf16.msra.mxu0 %v1469_v8  ;;  %1237 = vmatprep.mubr.msk.f32.mxu0 %vm1412_vm1, %v1413_v4 }
 0x58a   :  { %1315 = vmatprep.subr.bf16.mxu0 %v1411_v0 }
 0x58d   :  { %1317 = vmatpush3.bf16.msra.mxu0 %v1482_v12 }
 0x58e   :  { %1324 = vmatprep.subr.bf16.mxu0 %v1411_v0 }
 0x65b   :  { %v457_v2 = vpop.f32.mrb[8].mxu0 }
 0x65c   :  { %v461_v3 = vadd.f32 %v457_v2, %v142_v1  ;;  %v1217_v5 = vpop.f32.mrb[9].mxu0 }
 0x65e   :  { %1363 = vtanh.f32 %v461_v3  ;;  %v1101_v7 = vmul.f32 -1.442695, %v461_v3 }
 0x660   :  { %1365 = vpow2.f32 %v1101_v7 }
 0x668   :  { %v1364_v6 = vpop.eup %1363 }
 0x669   :  { %471 = vrot.lane.b32.xlu0 %v1364_v6, %s1414_s13 }
 0x66a   :  { %v1366_v9 = vpop.eup %1365 }
 0x66b   :  { %v465_v10 = vadd.f32 1.0, %v1366_v9 }
 0x66d   :  { %1367 = vrcp.f32 %v465_v10 }
 0x677   :  { %v1368_v11 = vpop.eup %1367 }
 0x678   :  { %v469_v16 = vmul.f32 %v1368_v11, %v377_v47 }
 0x6db   :  { %v472_v14 = vpop.permute.xlu0 %471 }
 0x6dc   :  { %v474_v15 = vmul.f32 %v1368_v11, %v472_v14 }
 0x6de   :  { %476 = vrot.lane.b32.xlu1 %v474_v15, %s1415_s3 }
 0x750   :  { %v477_v17 = vpop.permute.xlu1 %476 }
 0x751   :  { %v479_v18 = vadd.f32 %v477_v17, %v469_v16 }
 0x753   :  { %1369 = vtanh.f32 %v479_v18 }
 0x75d   :  { %v1370_v19 = vpop.eup %1369 }
 0x75e   :  { %482 = vrot.lane.b32.xlu0 %v1370_v19, %s1414_s13 }
 0x7d0   :  { %v483_v20 = vpop.permute.xlu0 %482 }
 0x7d1   :  { %v485_v21 = vmul.f32 %v1368_v11, %v483_v20 }
 0x7d3   :  { %489 = vrot.lane.b32.xlu1 %v485_v21, %s1415_s3 }
 0x845   :  { %v490_v22 = vpop.permute.xlu1 %489 }
 0x846   :  { %1227 = vmatmul.mubr.msk.f32.vlgmr.msra.gmra.mrb[4].mxu1 %vm183_vm2, %v490_v22 }
 0x847   :  { %1320 = vmatpush3.bf16.msra.mxu1 %v1469_v8  ;;  %1248 = vmatprep.mubr.msk.f32.mxu1 %vm1412_vm1, %v1413_v4 }
 0x848   :  { %1321 = vmatprep.subr.bf16.mxu1 %v1411_v0 }
 0x84b   :  { %1323 = vmatpush3.bf16.msra.mxu1 %v1482_v12 }
 0x84c   :  { %1330 = vmatprep.subr.bf16.mxu1 %v1411_v0 }
 0x919   :  { %v559_v24 = vpop.f32.mrb[4].mxu1 }
 0x91a   :  { %v563_v25 = vadd.f32 %v559_v24, %v147_v23  ;;  %v1228_v26 = vpop.f32.mrb[5].mxu1 }
 0x91c   :  { %1371 = vtanh.f32 %v563_v25  ;;  %v1103_v28 = vmul.f32 -1.442695, %v563_v25 }
 0x91e   :  { %1373 = vpow2.f32 %v1103_v28 }
 0x926   :  { %v1372_v27 = vpop.eup %1371 }
 0x927   :  { %573 = vrot.lane.b32.xlu0 %v1372_v27, %s1414_s13 }
 0x928   :  { %v1374_v29 = vpop.eup %1373 }
 0x929   :  { %v567_v30 = vadd.f32 1.0, %v1374_v29 }
 0x92b   :  { %1375 = vrcp.f32 %v567_v30 }
 0x935   :  { %v1376_v31 = vpop.eup %1375 }
 0x936   :  { %v571_v34 = vmul.f32 %v1376_v31, %v479_v18  ;;  %v162_v18 = vadd.f32 %v1503_v13, %v1554_v62 }
 0x999   :  { %v574_v32 = vpop.permute.xlu0 %573 }
 0x99a   :  { %v576_v33 = vmul.f32 %v1376_v31, %v574_v32 }
 0x99c   :  { %578 = vrot.lane.b32.xlu1 %v576_v33, %s1415_s3 }
 0xa0e   :  { %v579_v35 = vpop.permute.xlu1 %578 }
 0xa0f   :  { %v581_v36 = vadd.f32 %v579_v35, %v571_v34  ;;  %v167_v34 = vadd.f32 %v1552_v61, %v1503_v13  ;;  %v996_v61 = vld [vmem:[%s1645_s4] sm:$0xff] }
 0xa11   :  { %1377 = vtanh.f32 %v581_v36 }
 0xa1b   :  { %v1378_v37 = vpop.eup %1377 }
 0xa1c   :  { %584 = vrot.lane.b32.xlu0 %v1378_v37, %s1414_s13 }
 0xa8e   :  { %v585_v38 = vpop.permute.xlu0 %584 }
 0xa8f   :  { %v587_v39 = vmul.f32 %v1376_v31, %v585_v38 }
 0xa91   :  { %591 = vrot.lane.b32.xlu1 %v587_v39, %s1415_s3 }
 0xb03   :  { %v592_v40 = vpop.permute.xlu1 %591 }
 0xb04   :  { %1238 = vmatmul.mubr.msk.f32.vlgmr.msra.gmra.mrb[10].mxu0 %vm183_vm2, %v592_v40 }
 0xb05   :  { %1326 = vmatpush3.bf16.msra.mxu0 %v1469_v8  ;;  %1259 = vmatprep.mubr.msk.f32.mxu0 %vm1412_vm1, %v1413_v4 }
 0xb06   :  { %1327 = vmatprep.subr.bf16.mxu0 %v1411_v0 }
 0xb09   :  { %1329 = vmatpush3.bf16.msra.mxu0 %v1482_v12 }
 0xb0a   :  { %1336 = vmatprep.subr.bf16.mxu0 %v1411_v0 }
 0xbd7   :  { %v661_v42 = vpop.f32.mrb[10].mxu0 }
 0xbd8   :  { %v665_v43 = vadd.f32 %v661_v42, %v152_v41  ;;  %v1239_v44 = vpop.f32.mrb[11].mxu0 }
 0xbda   :  { %1379 = vtanh.f32 %v665_v43  ;;  %v1105_v46 = vmul.f32 -1.442695, %v665_v43 }
 0xbdc   :  { %1381 = vpow2.f32 %v1105_v46 }
 0xbe4   :  { %v1380_v45 = vpop.eup %1379 }
 0xbe5   :  { %675 = vrot.lane.b32.xlu0 %v1380_v45, %s1414_s13 }
 0xbe6   :  { %v1382_v47 = vpop.eup %1381 }
 0xbe7   :  { %v669_v48 = vadd.f32 1.0, %v1382_v47  ;;  %v997_v47 = vld [vmem:[%s1645_s4 + $0x8] sm:$0xff] }
 0xbe9   :  { %1383 = vrcp.f32 %v669_v48  ;;  %v998_v48 = vld [vmem:[%s1645_s4 + $0x10] sm:$0xff] }
 0xbf3   :  { %v1384_v49 = vpop.eup %1383 }
 0xbf4   :  { %v673_v52 = vmul.f32 %v1384_v49, %v581_v36 }
 0xc57   :  { %v676_v50 = vpop.permute.xlu0 %675 }
 0xc58   :  { %v678_v51 = vmul.f32 %v1384_v49, %v676_v50  ;;  %v999_v50 = vld [vmem:[%s1645_s4 + $0x18] sm:$0xff] }
 0xc5a   :  { %680 = vrot.lane.b32.xlu1 %v678_v51, %s1415_s3  ;;  %v1340_v51 = vpack.c.bf16 %v999_v50, %v998_v48 }
 0xccc   :  { %v681_v53 = vpop.permute.xlu1 %680 }
 0xccd   :  { %v683_v54 = vadd.f32 %v681_v53, %v673_v52 }
 0xccf   :  { %1385 = vtanh.f32 %v683_v54 }
 0xcd9   :  { %v1386_v55 = vpop.eup %1385 }
 0xcda   :  { %686 = vrot.lane.b32.xlu0 %v1386_v55, %s1414_s13 }
 0xd4c   :  { %v687_v56 = vpop.permute.xlu0 %686 }
 0xd4d   :  { %v689_v57 = vmul.f32 %v1384_v49, %v687_v56  ;;  %v1337_v49 = vpack.c.bf16 %v997_v47, %v996_v61  ;;  %v1112_v56 = vld [vmem:[%s1646_s5] ss:$0 sm:$0xff] }
 0xd4f   :  { %693 = vrot.lane.b32.xlu1 %v689_v57, %s1415_s3 }
 0xdc1   :  { %v694_v58 = vpop.permute.xlu1 %693 }
 0xdc2   :  { %1249 = vmatmul.mubr.msk.f32.vlgmr.msra.gmra.mrb[6].mxu1 %vm183_vm2, %v694_v58 }
 0xdc3   :  { %1332 = vmatpush3.bf16.msra.mxu1 %v1469_v8  ;;  %1270 = vmatprep.mubr.msk.f32.mxu1 %vm1412_vm1, %v1413_v4 }
 0xdc4   :  { %1333 = vmatprep.subr.bf16.mxu1 %v1411_v0 }
 0xdc7   :  { %1335 = vmatpush3.bf16.msra.mxu1 %v1482_v12 }
 0xe95   :  { %v763_v63 = vpop.f32.mrb[6].mxu1 }
 0xe96   :  { %v767_v1 = vadd.f32 %v763_v63, %v157_v60  ;;  %v1250_v2 = vpop.f32.mrb[7].mxu1 }
 0xe98   :  { %1387 = vtanh.f32 %v767_v1  ;;  %v1107_v5 = vmul.f32 -1.442695, %v767_v1 }
 0xe9a   :  { %1389 = vpow2.f32 %v1107_v5 }
 0xea2   :  { %v1388_v3 = vpop.eup %1387 }
 0xea3   :  { %777 = vrot.lane.b32.xlu0 %v1388_v3, %s1414_s13 }
 0xea4   :  { %v1390_v8 = vpop.eup %1389 }
 0xea5   :  { %v771_v6 = vadd.f32 1.0, %v1390_v8 }
 0xea7   :  { %1391 = vrcp.f32 %v771_v6 }
 0xeb1   :  { %v1392_v7 = vpop.eup %1391 }
 0xeb2   :  { %v775_v12 = vmul.f32 %v1392_v7, %v683_v54 }
 0xf15   :  { %v778_v9 = vpop.permute.xlu0 %777 }
 0xf16   :  { %v780_v10 = vmul.f32 %v1392_v7, %v778_v9 }
 0xf18   :  { %782 = vrot.lane.b32.xlu1 %v780_v10, %s1415_s3 }
 0xf8a   :  { %v783_v11 = vpop.permute.xlu1 %782 }
 0xf8b   :  { %v785_v59 = vadd.f32 %v783_v11, %v775_v12 }
 0xf8d   :  { %1393 = vtanh.f32 %v785_v59 }
 0xf97   :  { %v1394_v14 = vpop.eup %1393 }
 0xf98   :  { %788 = vrot.lane.b32.xlu0 %v1394_v14, %s1414_s13 }
0x100a   :  { %v789_v15 = vpop.permute.xlu0 %788 }
0x100b   :  { %v791_v16 = vmul.f32 %v1392_v7, %v789_v15 }
0x100d   :  { %795 = vrot.lane.b32.xlu1 %v791_v16, %s1415_s3 }
0x107f   :  { %v796_v17 = vpop.permute.xlu1 %795 }
0x1080   :  { %1260 = vmatmul.mubr.msk.f32.vlgmr.msra.gmra.mrb[12].mxu0 %vm183_vm2, %v796_v17 }
0x1081   :  { %1281 = vmatprep.mubr.msk.f32.mxu0 %vm1412_vm1, %v1413_v4  ;;  %1338 = vmatpush3.bf16.msra.mxu0 %v1337_v49 }
0x1082   :  { %1339 = vmatprep.subr.bf16.mxu0 %v1411_v0 }
0x1085   :  { %1341 = vmatpush3.bf16.msra.mxu0 %v1340_v51 }
0x1153   :  { %v865_v19 = vpop.f32.mrb[12].mxu0 }
0x1154   :  { %v869_v20 = vadd.f32 %v865_v19, %v162_v18  ;;  %v1261_v21 = vpop.f32.mrb[13].mxu0 }
0x1156   :  { %1395 = vtanh.f32 %v869_v20  ;;  %v1109_v23 = vmul.f32 -1.442695, %v869_v20 }
0x1158   :  { %1397 = vpow2.f32 %v1109_v23 }
0x1160   :  { %v1396_v22 = vpop.eup %1395 }
0x1161   :  { %879 = vrot.lane.b32.xlu0 %v1396_v22, %s1414_s13 }
0x1162   :  { %v1398_v24 = vpop.eup %1397 }
0x1163   :  { %v873_v25 = vadd.f32 1.0, %v1398_v24 }
0x1165   :  { %1399 = vrcp.f32 %v873_v25 }
0x116f   :  { %v1400_v26 = vpop.eup %1399 }
0x1170   :  { %v877_v4 = vmul.f32 %v1400_v26, %v785_v59 }
0x11d3   :  { %v880_v27 = vpop.permute.xlu0 %879 }
0x11d4   :  { %v882_v28 = vmul.f32 %v1400_v26, %v880_v27 }
0x11d6   :  { %884 = vrot.lane.b32.xlu1 %v882_v28, %s1415_s3 }
0x1248   :  { %v885_v29 = vpop.permute.xlu1 %884 }
0x1249   :  { %v887_v62 = vadd.f32 %v885_v29, %v877_v4 }
0x124b   :  { %1401 = vtanh.f32 %v887_v62 }
0x1255   :  { %v1402_v30 = vpop.eup %1401 }
0x1256   :  { %890 = vrot.lane.b32.xlu0 %v1402_v30, %s1414_s13 }
0x12c8   :  { %v891_v31 = vpop.permute.xlu0 %890 }
0x12c9   :  { %v893_v32 = vmul.f32 %v1400_v26, %v891_v31 }
0x12cb   :  { %897 = vrot.lane.b32.xlu1 %v893_v32, %s1415_s3 }
0x133d   :  { %v898_v33 = vpop.permute.xlu1 %897 }
0x133e   :  { %1271 = vmatmul.mubr.msk.f32.vlgmr.msra.gmra.mrb[8].mxu1 %vm183_vm2, %v898_v33 }
0x1411   :  { %v967_v35 = vpop.f32.mrb[8].mxu1 }
0x1412   :  { %v971_v36 = vadd.f32 %v967_v35, %v167_v34  ;;  %v1272_v37 = vpop.f32.mrb[9].mxu1 }
0x1414   :  { %1403 = vtanh.f32 %v971_v36  ;;  %v1111_v39 = vmul.f32 -1.442695, %v971_v36 }
0x1416   :  { %1405 = vpow2.f32 %v1111_v39 }
0x141e   :  { %v1404_v38 = vpop.eup %1403 }
0x141f   :  { %981 = vrot.lane.b32.xlu0 %v1404_v38, %s1414_s13 }
0x1420   :  { %v1406_v40 = vpop.eup %1405 }
0x1421   :  { %v975_v41 = vadd.f32 1.0, %v1406_v40 }
0x1423   :  { %1407 = vrcp.f32 %v975_v41 }
0x142d   :  { %v1408_v42 = vpop.eup %1407 }
0x142e   :  { %v979_v45 = vmul.f32 %v1408_v42, %v887_v62 }
0x1491   :  { %v982_v43 = vpop.permute.xlu0 %981 }
0x1492   :  { %v984_v44 = vmul.f32 %v1408_v42, %v982_v43 }
0x1494   :  { %986 = vrot.lane.b32.xlu1 %v984_v44, %s1415_s3 }
0x1506   :  { %v987_v46 = vpop.permute.xlu1 %986 }
0x1507   :  { %v989_v13 = vadd.f32 %v987_v46, %v979_v45 }
0x1509   :  { %1409 = vtanh.f32 %v989_v13 }
0x1513   :  { %v1410_v52 = vpop.eup %1409 }
0x1514   :  { %992 = vrot.lane.b32.xlu0 %v1410_v52, %s1414_s13 }
0x1586   :  { %v993_v53 = vpop.permute.xlu0 %992 }
0x1587   :  { %v995_v54 = vmul.f32 %v1408_v42, %v993_v53 }
0x1589   :  { %1008 = vrot.lane.b32.xlu1 %v995_v54, %s1415_s3 }
0x15fb   :  { %v1009_v55 = vpop.permute.xlu1 %1008 }
0x15fc   :  { %1282 = vmatmul.mubr.msk.f32.vlgmr.msra.gmra.mrb[14].mxu0 %vm183_vm2, %v1009_v55 }
0x16cf   :  { %v1078_v57 = vpop.f32.mrb[14].mxu0 }
0x16d0   :  { %v1079_v58 = vadd.f32 %v1112_v56, %v1078_v57  ;;  %v1283_v60 = vpop.f32.mrb[15].mxu0 }
0x16d2   :  { %1083 = vst.msk [vmem:[%s1647_s6] sm:$0xff] %vm1082_vm3, %v1079_v58 }

</bundles_post_ra>
